<compile_context>
chip_gen: v5e
topology: v5e:2x2
jax: 0.10.0
libtpu: 0.0.40
codegen_flags: <defaults>
</compile_context>

<pallas_src>
import math

import jax
import jax.numpy as jnp
from jax.experimental import pallas as pl
from jax.experimental.pallas import tpu as pltpu


# ----------------------------------------------------------------------------
# Helpers
# ----------------------------------------------------------------------------
def _round_up(x, m):
    return (x + m - 1) // m * m


def _cdiv(a, b):
    return -(-a // b)


def _gelu_tanh(x):
    # PyTorch nn.GELU(approximate='tanh'):
    # 0.5 * x * (1 + tanh(sqrt(2/pi) * (x + 0.044715 * x^3)))
    c = 0.7978845608028654  # sqrt(2/pi)
    return 0.5 * x * (1.0 + jnp.tanh(c * (x + 0.044715 * x * x * x)))


def _tpu_generation():
    """Best-effort TPU generation: 5 (v5e-like), 6 (v6e), 7 (v7x)."""
    try:
        kind = jax.devices()[0].device_kind.lower()
    except Exception:
        return 6
    if "v7" in kind or "7x" in kind:
        return 7
    if "v6" in kind or "trillium" in kind:
        return 6
    if "v5" in kind or "v4" in kind or "v3" in kind or "v2" in kind:
        return 5
    return 6


def _vmem_capacity_bytes(gen):
    try:
        return int(pltpu.get_tpu_info().vmem_capacity_bytes)
    except Exception:
        # v7x: 64 MiB per TC; v5e/v6e: 128 MiB.
        return (64 if gen >= 7 else 128) * 2 ** 20


# ----------------------------------------------------------------------------
# Kernels
# ----------------------------------------------------------------------------
def _resident_kernel(x_ref, wfc_ref, bfc_ref, wproj_ref, bproj_ref, o_ref):
    # Weights are resident in VMEM (constant block index); one row tile/step.
    h = jnp.dot(x_ref[...], wfc_ref[...], preferred_element_type=jnp.float32)
    g = _gelu_tanh(h + bfc_ref[...])          # f32 elementwise (VPU/EUP)
    y = jnp.dot(g.astype(jnp.bfloat16), wproj_ref[...],
                preferred_element_type=jnp.float32) + bproj_ref[...]
    o_ref[...] = y.astype(o_ref.dtype)


def _streaming_kernel_acc_out(x_ref, wfc_ref, bfc_ref, wproj_ref, bproj_ref,
                              o_ref):
    # f32 output: accumulate directly into the (hidden-axis-resident) out tile.
    h_idx = pl.program_id(1)

    @pl.when(h_idx == 0)
    def _():
        o_ref[...] = jnp.broadcast_to(bproj_ref[...], o_ref.shape)

    h = jnp.dot(x_ref[...], wfc_ref[...],
                preferred_element_type=jnp.float32) + bfc_ref[...]
    g = _gelu_tanh(h)
    o_ref[...] += jnp.dot(g.astype(jnp.bfloat16), wproj_ref[...],
                          preferred_element_type=jnp.float32)


def _streaming_kernel_scratch(x_ref, wfc_ref, bfc_ref, wproj_ref, bproj_ref,
                              o_ref, acc_ref):
    # Low-precision output: f32 VMEM accumulator, store on last hidden step.
    h_idx = pl.program_id(1)

    @pl.when(h_idx == 0)
    def _():
        acc_ref[...] = jnp.broadcast_to(bproj_ref[...], acc_ref.shape)

    h = jnp.dot(x_ref[...], wfc_ref[...],
                preferred_element_type=jnp.float32) + bfc_ref[...]
    g = _gelu_tanh(h)
    acc_ref[...] += jnp.dot(g.astype(jnp.bfloat16), wproj_ref[...],
                            preferred_element_type=jnp.float32)

    @pl.when(h_idx == pl.num_programs(1) - 1)
    def _():
        o_ref[...] = acc_ref[...].astype(o_ref.dtype)


# ----------------------------------------------------------------------------
# Wrapper
# ----------------------------------------------------------------------------
def prepare_mlp_params(w_fc, b_fc, w_proj, b_proj, *, gen=None):
    """Pad + cast weights once (do this at model init, not per forward call)."""
    if gen is None:
        gen = _tpu_generation()
    C, H = w_fc.shape
    lane_mult = 128 if gen <= 5 else 256      # v6e/v7x MXUs are 2x256x256
    Cp = _round_up(max(C, 128), lane_mult)
    Hp = _round_up(max(H, 128), lane_mult)

    def pad2(w, r, c, dt):
        w = w.astype(dt)
        if w.shape == (r, c):
            return w
        return jnp.zeros((r, c), dt).at[:w.shape[0], :w.shape[1]].set(w)

    return dict(
        gen=gen, C=C, H=H, Cp=Cp, Hp=Hp,
        w_fc=pad2(w_fc, Cp, Hp, jnp.bfloat16),
        b_fc=pad2(b_fc.reshape(1, H), 1, Hp, jnp.float32),
        w_proj=pad2(w_proj, Hp, Cp, jnp.bfloat16),
        b_proj=pad2(b_proj.reshape(1, C), 1, Cp, jnp.float32),
    )


def mlp_forward(x, params, *, tm=None, tn=None):
    """x: (..., C). params: from prepare_mlp_params. Returns (..., C)."""
    gen = params["gen"]
    C, H, Cp, Hp = params["C"], params["H"], params["Cp"], params["Hp"]
    *lead, Cx = x.shape
    assert Cx == C, f"expected last dim {C}, got {Cx}"
    M = 1
    for d in lead:
        M *= d
    out_dtype = x.dtype
    out_bytes = jnp.dtype(out_dtype).itemsize

    vmem_cap = _vmem_capacity_bytes(gen)
    usable = vmem_cap - 16 * 2 ** 20          # headroom for Mosaic internals

    # Row tile: 512 on v6e/v7x (arithmetic intensity vs HBM), 256 on v5e.
    if tm is None:
        tm = 256 if gen <= 5 else 512
        tm = min(tm, _round_up(M, 8))
        # v7x: keep >= 2 row tiles so both TensorCores are fed.
        if gen >= 7 and M > 8 and _cdiv(M, tm) < 2:
            tm = max(8, _round_up(_cdiv(M, 2), 8))
    tm = max(8, _round_up(tm, 8))

    def resident_footprint(tm_):
        return (
            2 * Cp * Hp * 2                   # W_fc + W_proj (bf16, single buf)
            + (Hp + Cp) * 4                   # biases (f32)
            + 2 * tm_ * Cp * 2                # x tile (bf16, double buffered)
            + 2 * tm_ * Cp * out_bytes        # out tile (double buffered)
            + tm_ * Hp * 4 + tm_ * Hp * 2     # hidden activation temps (f32+bf16)
            + tm_ * Cp * 4                    # f32 result temp
        )

    use_resident = resident_footprint(tm) <= usable
    if not use_resident and tm > 256 and resident_footprint(256) <= usable:
        tm = 256                              # shrink row tile to keep residency
        use_resident = True

    Mp = _round_up(M, tm)
    n_row_tiles = Mp // tm

    # Pad / cast x only if needed (avoid a wasted HBM round-trip).
    x2 = x.reshape(M, C)
    if Mp == M and Cp == C:
        x_p = x2.astype(jnp.bfloat16)
    else:
        x_p = jnp.zeros((Mp, Cp), jnp.bfloat16).at[:M, :C].set(
            x2.astype(jnp.bfloat16))

    flops = 4 * Mp * Cp * Hp                  # two matmuls
    transcendentals = Mp * Hp                 # tanh per hidden element

    if use_resident:
        cost = pl.CostEstimate(
            flops=flops, transcendentals=transcendentals,
            bytes_accessed=int(Mp * Cp * 2 + 2 * Cp * Hp * 2 + (Hp + Cp) * 4
                               + Mp * Cp * out_bytes))
        vmem_limit = int(min(vmem_cap - 2 * 2 ** 20,
                             max(32 * 2 ** 20,
                                 resident_footprint(tm) + 8 * 2 ** 20)))
        out_p = pl.pallas_call(
            _resident_kernel,
            out_shape=jax.ShapeDtypeStruct((Mp, Cp), out_dtype),
            grid_spec=pltpu.PrefetchScalarGridSpec(
                num_scalar_prefetch=0,
                grid=(n_row_tiles,),
                in_specs=[
                    pl.BlockSpec((tm, Cp), lambda i: (i, 0)),   # x rows
                    pl.BlockSpec((Cp, Hp), lambda i: (0, 0)),   # W_fc (resident)
                    pl.BlockSpec((1, Hp), lambda i: (0, 0)),    # b_fc (resident)
                    pl.BlockSpec((Hp, Cp), lambda i: (0, 0)),   # W_proj (resident)
                    pl.BlockSpec((1, Cp), lambda i: (0, 0)),    # b_proj (resident)
                ],
                out_specs=pl.BlockSpec((tm, Cp), lambda i: (i, 0)),
            ),
            compiler_params=pltpu.CompilerParams(
                dimension_semantics=("parallel",),
                vmem_limit_bytes=vmem_limit,
            ),
            cost_estimate=cost,
        )(x_p, params["w_fc"], params["b_fc"], params["w_proj"],
          params["b_proj"])
    else:
        # Streaming fallback: tile the hidden dim on a trailing reduction axis.
        if tn is None:
            tn = 512 if Hp % 512 == 0 else (256 if Hp % 256 == 0 else 128)
        assert Hp % tn == 0
        n_h_tiles = Hp // tn

        acc_into_out = (out_dtype == jnp.float32)
        kernel = (_streaming_kernel_acc_out if acc_into_out
                  else _streaming_kernel_scratch)
        scratch = ([] if acc_into_out
                   else [pltpu.VMEM((tm, Cp), jnp.float32)])

        footprint = (
            2 * tm * Cp * 2 + 2 * Cp * tn * 2 + 2 * tn * 4
            + 2 * tn * Cp * 2 + 2 * Cp * 4 + 2 * tm * Cp * out_bytes
            + tm * tn * 4 + tm * tn * 2
            + (0 if acc_into_out else tm * Cp * 4)
        )
        vmem_limit = int(min(vmem_cap - 2 * 2 ** 20,
                             max(32 * 2 ** 20, 2 * footprint)))
        cost = pl.CostEstimate(
            flops=flops, transcendentals=transcendentals,
            bytes_accessed=int(Mp * Cp * 2
                               + n_row_tiles * (2 * Cp * Hp * 2 + (Hp + Cp) * 4)
                               + Mp * Cp * out_bytes))

        out_p = pl.pallas_call(
            kernel,
            out_shape=jax.ShapeDtypeStruct((Mp, Cp), out_dtype),
            grid_spec=pltpu.PrefetchScalarGridSpec(
                num_scalar_prefetch=0,
                grid=(n_row_tiles, n_h_tiles),
                in_specs=[
                    pl.BlockSpec((tm, Cp), lambda i, k: (i, 0)),   # x rows
                    pl.BlockSpec((Cp, tn), lambda i, k: (0, k)),   # W_fc slab
                    pl.BlockSpec((1, tn), lambda i, k: (0, k)),    # b_fc slab
                    pl.BlockSpec((tn, Cp), lambda i, k: (k, 0)),   # W_proj slab
                    pl.BlockSpec((1, Cp), lambda i, k: (0, 0)),    # b_proj
                ],
                out_specs=pl.BlockSpec((tm, Cp), lambda i, k: (i, 0)),
                scratch_shapes=scratch,
            ),
            compiler_params=pltpu.CompilerParams(
                dimension_semantics=("parallel", "arbitrary"),
                vmem_limit_bytes=vmem_limit,
            ),
            cost_estimate=cost,
        )(x_p, params["w_fc"], params["b_fc"], params["w_proj"],
          params["b_proj"])

    return out_p[:M, :C].reshape(*lead, C)


# ----------------------------------------------------------------------------
# Reference + test
# ----------------------------------------------------------------------------
def _ref_mlp(x, w_fc, b_fc, w_proj, b_proj):
    h = jnp.einsum("btc,ch->bth", x, w_fc) + b_fc
    g = _gelu_tanh(h)
    return jnp.einsum("bth,hc->btc", g, w_proj) + b_proj


if __name__ == "__main__":
    # Small config: batch=2, seq=8, n_embd=32 -> hidden = 4*32 = 128
    B, T, C = 2, 8, 32
    H = 4 * C

    key = jax.random.PRNGKey(0)
    k_x, k_wfc, k_bfc, k_wproj, k_bproj = jax.random.split(key, 5)

    x = jax.random.normal(k_x, (B, T, C), dtype=jnp.float32)
    # nn.Linear-like init (uniform in +-1/sqrt(fan_in)), deterministic.
    w_fc = jax.random.uniform(k_wfc, (C, H), dtype=jnp.float32,
                              minval=-1.0 / math.sqrt(C), maxval=1.0 / math.sqrt(C))
    b_fc = jax.random.uniform(k_bfc, (H,), dtype=jnp.float32,
                              minval=-1.0 / math.sqrt(C), maxval=1.0 / math.sqrt(C))
    w_proj = jax.random.uniform(k_wproj, (H, C), dtype=jnp.float32,
                                minval=-1.0 / math.sqrt(H), maxval=1.0 / math.sqrt(H))
    b_proj = jax.random.uniform(k_bproj, (C,), dtype=jnp.float32,
                                minval=-1.0 / math.sqrt(H), maxval=1.0 / math.sqrt(H))

    # Weight padding / casting done once ("model init"), not per forward call.
    params = prepare_mlp_params(w_fc, b_fc, w_proj, b_proj)

    out = mlp_forward(x, params)
    out = jax.block_until_ready(out)

    ref = _ref_mlp(x, w_fc, b_fc, w_proj, b_proj)
    assert out.shape == (B, T, C)
    # bf16 MXU operands with f32 accumulation -> ~1e-2-level tolerance vs f32 ref.
    assert jnp.allclose(out, ref, atol=2e-2, rtol=2e-2), "mismatch vs reference"

    print("KERNEL_OK")
</pallas_src>

<mosaic_0001>
module attributes {stable_mosaic.version = 11 : i64} {
  func.func @_resident_kernel(%arg0: i32, %arg1: memref<16x256xbf16, #tpu.memory_space<vmem>>, %arg2: memref<256x256xbf16, #tpu.memory_space<vmem>>, %arg3: memref<1x256xf32, #tpu.memory_space<vmem>>, %arg4: memref<256x256xbf16, #tpu.memory_space<vmem>>, %arg5: memref<1x256xf32, #tpu.memory_space<vmem>>, %arg6: memref<16x256xf32, #tpu.memory_space<vmem>>) attributes {dimension_semantics = [#tpu.dimension_semantics<parallel>], iteration_bounds = array<i64: 1>, scalar_prefetch = 0 : i64, scratch_operands = 0 : i64, tpu.core_type = #tpu.core_type<tc>, window_params = [{transform_indices = @transform_0, window_bounds = array<i64: 16, 256>}, {pipeline_mode = #tpu.pipeline_mode<synchronous>, transform_indices = @transform_1, window_bounds = array<i64: 256, 256>}, {pipeline_mode = #tpu.pipeline_mode<synchronous>, transform_indices = @transform_2, window_bounds = array<i64: 1, 256>}, {pipeline_mode = #tpu.pipeline_mode<synchronous>, transform_indices = @transform_3, window_bounds = array<i64: 256, 256>}, {pipeline_mode = #tpu.pipeline_mode<synchronous>, transform_indices = @transform_4, window_bounds = array<i64: 1, 256>}, {transform_indices = @transform_5, window_bounds = array<i64: 16, 256>}]} {
    %c0 = arith.constant 0 : index
    %c0_0 = arith.constant 0 : index
    %0 = vector.load %arg1[%c0, %c0_0] : memref<16x256xbf16, #tpu.memory_space<vmem>>, vector<16x256xbf16>
    %c0_1 = arith.constant 0 : index
    %c0_2 = arith.constant 0 : index
    %1 = vector.load %arg2[%c0_1, %c0_2] : memref<256x256xbf16, #tpu.memory_space<vmem>>, vector<256x256xbf16>
    %cst = arith.constant dense<0.000000e+00> : vector<16x256xf32>
    %2 = tpu.matmul %0, %1, %cst {dimension_numbers = #tpu.dot_dimension_numbers<[1], [0], [0], [1], [0, 0, 1, 1], [], []>} : vector<16x256xbf16>, vector<256x256xbf16>, vector<16x256xf32> -> vector<16x256xf32>
    %c0_3 = arith.constant 0 : index
    %c0_4 = arith.constant 0 : index
    %3 = vector.load %arg3[%c0_3, %c0_4] : memref<1x256xf32, #tpu.memory_space<vmem>>, vector<1x256xf32>
    %4 = vector.broadcast %3 : vector<1x256xf32> to vector<16x256xf32>
    %5 = arith.addf %2, %4 : vector<16x256xf32>
    %cst_5 = arith.constant 5.000000e-01 : f32
    %6 = vector.broadcast %cst_5 : f32 to vector<16x256xf32>
    %7 = arith.mulf %6, %5 : vector<16x256xf32>
    %cst_6 = arith.constant 4.471500e-02 : f32
    %8 = vector.broadcast %cst_6 : f32 to vector<16x256xf32>
    %9 = arith.mulf %8, %5 : vector<16x256xf32>
    %10 = arith.mulf %9, %5 : vector<16x256xf32>
    %11 = arith.mulf %10, %5 : vector<16x256xf32>
    %12 = arith.addf %5, %11 : vector<16x256xf32>
    %cst_7 = arith.constant 0.797884583 : f32
    %13 = vector.broadcast %cst_7 : f32 to vector<16x256xf32>
    %14 = arith.mulf %13, %12 : vector<16x256xf32>
    %15 = math.tanh %14 : vector<16x256xf32>
    %cst_8 = arith.constant 1.000000e+00 : f32
    %16 = vector.broadcast %cst_8 : f32 to vector<16x256xf32>
    %17 = arith.addf %16, %15 : vector<16x256xf32>
    %18 = arith.mulf %7, %17 : vector<16x256xf32>
    %19 = arith.truncf %18 : vector<16x256xf32> to vector<16x256xbf16>
    %c0_9 = arith.constant 0 : index
    %c0_10 = arith.constant 0 : index
    %20 = vector.load %arg4[%c0_9, %c0_10] : memref<256x256xbf16, #tpu.memory_space<vmem>>, vector<256x256xbf16>
    %cst_11 = arith.constant dense<0.000000e+00> : vector<16x256xf32>
    %21 = tpu.matmul %19, %20, %cst_11 {dimension_numbers = #tpu.dot_dimension_numbers<[1], [0], [0], [1], [0, 0, 1, 1], [], []>} : vector<16x256xbf16>, vector<256x256xbf16>, vector<16x256xf32> -> vector<16x256xf32>
    %c0_12 = arith.constant 0 : index
    %c0_13 = arith.constant 0 : index
    %22 = vector.load %arg5[%c0_12, %c0_13] : memref<1x256xf32, #tpu.memory_space<vmem>>, vector<1x256xf32>
    %23 = vector.broadcast %22 : vector<1x256xf32> to vector<16x256xf32>
    %24 = arith.addf %21, %23 : vector<16x256xf32>
    %c0_14 = arith.constant 0 : index
    %c0_15 = arith.constant 0 : index
    %25 = vector.load %arg6[%c0_14, %c0_15] : memref<16x256xf32, #tpu.memory_space<vmem>>, vector<16x256xf32>
    tpu.vector_store %arg6[%c0_14, %c0_15], %24 {strides = array<i32>} : memref<16x256xf32, #tpu.memory_space<vmem>>, vector<16x256xf32>,
    return
  }
  func.func @transform_0(%arg0: i32) -> (i32, i32) {
    %c0_i32 = arith.constant 0 : i32
    %c0_i32_0 = arith.constant 0 : i32
    return %arg0, %c0_i32 : i32, i32
  }
  func.func @transform_1(%arg0: i32) -> (i32, i32) {
    %c0_i32 = arith.constant 0 : i32
    %c0_i32_0 = arith.constant 0 : i32
    %c0_i32_1 = arith.constant 0 : i32
    return %c0_i32, %c0_i32_0 : i32, i32
  }
  func.func @transform_2(%arg0: i32) -> (i32, i32) {
    %c0_i32 = arith.constant 0 : i32
    %c0_i32_0 = arith.constant 0 : i32
    %c0_i32_1 = arith.constant 0 : i32
    return %c0_i32, %c0_i32_0 : i32, i32
  }
  func.func @transform_3(%arg0: i32) -> (i32, i32) {
    %c0_i32 = arith.constant 0 : i32
    %c0_i32_0 = arith.constant 0 : i32
    %c0_i32_1 = arith.constant 0 : i32
    return %c0_i32, %c0_i32_0 : i32, i32
  }
  func.func @transform_4(%arg0: i32) -> (i32, i32) {
    %c0_i32 = arith.constant 0 : i32
    %c0_i32_0 = arith.constant 0 : i32
    %c0_i32_1 = arith.constant 0 : i32
    return %c0_i32, %c0_i32_0 : i32, i32
  }
  func.func @transform_5(%arg0: i32) -> (i32, i32) {
    %c0_i32 = arith.constant 0 : i32
    %c0_i32_0 = arith.constant 0 : i32
    return %arg0, %c0_i32 : i32, i32
  }
}

</mosaic_0001>

<bundles_post_ra>
// kernel: tpu_custom_call.1
= control target key start
LH: loop header
LB: loop body
LE: loop exit
PB: predicated region body
PF: predicated region fallthrough
CT: control target
= control target key end

     0   :  { %10 = vsyncpa [#allocation3], 0  ;;  %s1205_s0 = inlined_call_operand.hbm [shape: bf16[16,256], index: 0, kind: input, shape index: {}]   ;;  %s1206_s1 = inlined_call_operand.hbm [shape: bf16[256,256], index: 1, kind: input, shape index: {}]   ;;  %s1207_s2 = inlined_call_operand.hbm [shape: f32[1,256], index: 2, kind: input, shape index: {}]   ;;  %s1208_s3 = inlined_call_operand.hbm [shape: bf16[256,256], index: 3, kind: input, shape index: {}]   ;;  %s1209_s4 = inlined_call_operand.vmem [shape: f32[1,256], index: 4, kind: input, shape index: {}]   ;;  %s1210_s5 = inlined_call_operand.hbm [shape: f32[16,256], index: 5, kind: output, shape index: {}]  }
   0x1   :  { %11 = vsyncpa [#allocation6], 0 }
   0x2   :  { %12 = vsyncpa [#allocation9], 0 }
   0x3   :  { %13 = vsyncpa [#allocation4], 0  ;;  %s31_s20 = sshll.u32 %s1206_s1, 4  ;;  %s1140_s21 = smov [#allocation5]   ;;  %s32_s20 = int_to_ptr.hbm [resolvable:$true] %s31_s20 }
   0x4   :  { %s33_s22 = sshll.u32 %s1140_s21, 4  ;;  %s18_s25 = sshll.u32 %s1205_s0, 4  ;;  %s34_s22 = int_to_ptr.vmem [resolvable:$true] %s33_s22  ;;  %s19_s25 = int_to_ptr.hbm [resolvable:$true] %s18_s25 }
   0x5   :  { %s1141_s26 = smov 128   ;;  %s1142_s27 = smov 8  }
   0x6   :  { %39 = dma.hbm_to_vmem [thread:$0]  %s32_s20, 4096, %s34_s22, [#allocation6], %s1141_s26, %s1141_s26, %s1142_s27  }
   0x7   :  { %s1143_s28 = smov [#allocation2]   ;;  %s45_s7 = sshll.u32 %s1207_s2, 4  ;;  %s46_s7 = int_to_ptr.hbm [resolvable:$true] %s45_s7 }
   0x8   :  { %s20_s29 = sshll.u32 %s1143_s28, 4  ;;  %s55_s9 = sshll.u32 %s1208_s3, 4  ;;  %s21_s29 = int_to_ptr.vmem [resolvable:$true] %s20_s29  ;;  %s56_s9 = int_to_ptr.hbm [resolvable:$true] %s55_s9 }
   0x9   :  { %26 = dma.hbm_to_vmem [thread:$0]  %s19_s25, 256, %s21_s29, [#allocation3], %s1141_s26, %s1141_s26, %s1142_s27  }
   0xa   :  { %s1144_s10 = smov [#allocation7]   ;;  %s1145_s0 = smov [#allocation8]  }
   0xb   :  { %s47_s11 = sshll.u32 %s1144_s10, 4  ;;  %s57_s12 = sshll.u32 %s1145_s0, 4  ;;  %s48_s11 = int_to_ptr.vmem [resolvable:$true] %s47_s11  ;;  %s58_s12 = int_to_ptr.vmem [resolvable:$true] %s57_s12 }
   0xc   :  { %50 = dma.hbm_to_vmem [thread:$0]  %s46_s7, 32, %s48_s11, [#allocation6]  }
   0xd   :  { %63 = dma.hbm_to_vmem [thread:$0]  %s56_s9, 4096, %s58_s12, [#allocation9], %s1141_s26, %s1141_s26, %s1142_s27  }
   0xe   :  { %1132 = dma.done.wait [#allocation3], 256  }
   0xf   :  { %1133 = vsyncadd [#allocation3], 4294967040 }
  0x10   :  { %1134 = dma.done.wait [#allocation6], 4128  }
  0x11   :  { %1135 = vsyncadd [#allocation6], 4294963168 }
  0x12   :  { %1136 = dma.done.wait [#allocation9], 4096  }
  0x13   :  { %1137 = vsyncadd [#allocation9], 4294963200  ;;  %v731_v0 = vld [vmem:[#allocation5 + $0x70] sm:$0xf]  ;;  %v946_v1 = vld [vmem:[#allocation5 + $0x74] sm:$0xf0] }
  0x14   :  { %v795_v2 = vld [vmem:[#allocation5 + $0xf0] sm:$0xf]  ;;  %v732_v3 = vor.u32 %v946_v1, %v731_v0  ;;  %v962_v4 = vld [vmem:[#allocation5 + $0xf4] sm:$0xf0]  ;;  %v945_v5 = vld [vmem:[#allocation5 + $0x74] sm:$0xf] }
  0x15   :  { %v733_v6 = vld [vmem:[#allocation5 + $0x78] sm:$0xf0]  ;;  %v796_v7 = vor.u32 %v962_v4, %v795_v2  ;;  %v961_v9 = vld [vmem:[#allocation5 + $0xf4] sm:$0xf]  ;;  %v723_v11 = vld [vmem:[#allocation5 + $0x60] sm:$0xf] }
  0x16   :  { %v736_v8 = vor.u32 %v945_v5, %v733_v6  ;;  %v797_v10 = vld [vmem:[#allocation5 + $0xf8] sm:$0xf0]  ;;  %292 = vmatpush.bf16.msra.mxu0 %v732_v3  ;;  %v944_v13 = vld [vmem:[#allocation5 + $0x64] sm:$0xf0]  ;;  %v787_v14 = vld [vmem:[#allocation5 + $0xe0] sm:$0xf] }
  0x17   :  { %v800_v12 = vor.u32 %v961_v9, %v797_v10  ;;  %v960_v15 = vld [vmem:[#allocation5 + $0xe4] sm:$0xf0]  ;;  %306 = vmatpush.bf16.msra.mxu1 %v796_v7  ;;  %v724_v16 = vor.u32 %v944_v13, %v723_v11  ;;  %v943_v18 = vld [vmem:[#allocation5 + $0x64] sm:$0xf]  ;;  %v725_v19 = vld [vmem:[#allocation5 + $0x68] sm:$0xf0] }
  0x18   :  { %320 = vmatpush.bf16.msra.mxu2 %v736_v8  ;;  %v788_v17 = vor.u32 %v960_v15, %v787_v14  ;;  %v959_v20 = vld [vmem:[#allocation5 + $0xe4] sm:$0xf]  ;;  %v728_v21 = vor.u32 %v943_v18, %v725_v19  ;;  %v789_v22 = vld [vmem:[#allocation5 + $0xe8] sm:$0xf0]  ;;  %v715_v23 = vld [vmem:[#allocation5 + $0x50] sm:$0xf] }
  0x19   :  { %334 = vmatpush.bf16.msra.mxu3 %v800_v12  ;;  %v942_v24 = vld [vmem:[#allocation5 + $0x54] sm:$0xf0]  ;;  %v792_v25 = vor.u32 %v959_v20, %v789_v22  ;;  %v779_v26 = vld [vmem:[#allocation5 + $0xd0] sm:$0xf]  ;;  %v941_v28 = vld [vmem:[#allocation5 + $0x54] sm:$0xf] }
  0x1a   :  { %v958_v27 = vld [vmem:[#allocation5 + $0xd4] sm:$0xf0]  ;;  %293 = vmatpush.bf16.msra.mxu0 %v724_v16  ;;  %v716_v29 = vor.u32 %v942_v24, %v715_v23  ;;  %v717_v30 = vld [vmem:[#allocation5 + $0x58] sm:$0xf0]  ;;  %v957_v31 = vld [vmem:[#allocation5 + $0xd4] sm:$0xf] }
  0x1b   :  { %v781_v32 = vld [vmem:[#allocation5 + $0xd8] sm:$0xf0]  ;;  %307 = vmatpush.bf16.msra.mxu1 %v788_v17  ;;  %v780_v33 = vor.u32 %v958_v27, %v779_v26  ;;  %v720_v34 = vor.u32 %v941_v28, %v717_v30  ;;  %v707_v35 = vld [vmem:[#allocation5 + $0x40] sm:$0xf]  ;;  %v940_v36 = vld [vmem:[#allocation5 + $0x44] sm:$0xf0] }
  0x1c   :  { %321 = vmatpush.bf16.msra.mxu2 %v728_v21  ;;  %v771_v37 = vld [vmem:[#allocation5 + $0xc0] sm:$0xf]  ;;  %v784_v38 = vor.u32 %v957_v31, %v781_v32  ;;  %v956_v39 = vld [vmem:[#allocation5 + $0xc4] sm:$0xf0]  ;;  %v939_v40 = vld [vmem:[#allocation5 + $0x44] sm:$0xf]  ;;  %v708_v44 = vor.u32 %v940_v36, %v707_v35 }
  0x1d   :  { %335 = vmatpush.bf16.msra.mxu3 %v792_v25  ;;  %v709_v41 = vld [vmem:[#allocation5 + $0x48] sm:$0xf0]  ;;  %v955_v42 = vld [vmem:[#allocation5 + $0xc4] sm:$0xf]  ;;  %v772_v45 = vor.u32 %v956_v39, %v771_v37  ;;  %v699_v47 = vld [vmem:[#allocation5 + $0x30] sm:$0xf] }
  0x1e   :  { %v773_v43 = vld [vmem:[#allocation5 + $0xc8] sm:$0xf0]  ;;  %294 = vmatpush.bf16.msra.mxu0 %v716_v29  ;;  %v712_v46 = vor.u32 %v939_v40, %v709_v41  ;;  %v938_v48 = vld [vmem:[#allocation5 + $0x34] sm:$0xf0]  ;;  %v763_v49 = vld [vmem:[#allocation5 + $0xb0] sm:$0xf] }
  0x1f   :  { %308 = vmatpush.bf16.msra.mxu1 %v780_v33  ;;  %v776_v50 = vor.u32 %v955_v42, %v773_v43  ;;  %v954_v51 = vld [vmem:[#allocation5 + $0xb4] sm:$0xf0]  ;;  %v937_v52 = vld [vmem:[#allocation5 + $0x34] sm:$0xf]  ;;  %v701_v53 = vld [vmem:[#allocation5 + $0x38] sm:$0xf0]  ;;  %v700_v56 = vor.u32 %v938_v48, %v699_v47 }
  0x20   :  { %322 = vmatpush.bf16.msra.mxu2 %v720_v34  ;;  %v953_v54 = vld [vmem:[#allocation5 + $0xb4] sm:$0xf]  ;;  %v765_v55 = vld [vmem:[#allocation5 + $0xb8] sm:$0xf0]  ;;  %v764_v57 = vor.u32 %v954_v51, %v763_v49  ;;  %v704_v58 = vor.u32 %v937_v52, %v701_v53  ;;  %v691_v59 = vld [vmem:[#allocation5 + $0x20] sm:$0xf] }
  0x21   :  { %336 = vmatpush.bf16.msra.mxu3 %v784_v38  ;;  %v936_v60 = vld [vmem:[#allocation5 + $0x24] sm:$0xf0]  ;;  %v755_v61 = vld [vmem:[#allocation5 + $0xa0] sm:$0xf]  ;;  %v768_v62 = vor.u32 %v953_v54, %v765_v55  ;;  %v935_v0 = vld [vmem:[#allocation5 + $0x24] sm:$0xf] }
  0x22   :  { %295 = vmatpush.bf16.msra.mxu0 %v708_v44  ;;  %v952_v63 = vld [vmem:[#allocation5 + $0xa4] sm:$0xf0]  ;;  %v693_v1 = vld [vmem:[#allocation5 + $0x28] sm:$0xf0]  ;;  %v951_v2 = vld [vmem:[#allocation5 + $0xa4] sm:$0xf]  ;;  %v692_v4 = vor.u32 %v936_v60, %v691_v59 }
  0x23   :  { %309 = vmatpush.bf16.msra.mxu1 %v772_v45  ;;  %v757_v3 = vld [vmem:[#allocation5 + $0xa8] sm:$0xf0]  ;;  %v756_v5 = vor.u32 %v952_v63, %v755_v61  ;;  %v696_v6 = vor.u32 %v935_v0, %v693_v1  ;;  %v683_v7 = vld [vmem:[#allocation5 + $0x10] sm:$0xf]  ;;  %v934_v8 = vld [vmem:[#allocation5 + $0x14] sm:$0xf0] }
  0x24   :  { %323 = vmatpush.bf16.msra.mxu2 %v712_v46  ;;  %v747_v9 = vld [vmem:[#allocation5 + $0x90] sm:$0xf]  ;;  %v760_v10 = vor.u32 %v951_v2, %v757_v3  ;;  %v950_v11 = vld [vmem:[#allocation5 + $0x94] sm:$0xf0]  ;;  %v933_v12 = vld [vmem:[#allocation5 + $0x14] sm:$0xf]  ;;  %v684_v16 = vor.u32 %v934_v8, %v683_v7 }
  0x25   :  { %337 = vmatpush.bf16.msra.mxu3 %v776_v50  ;;  %v685_v13 = vld [vmem:[#allocation5 + $0x18] sm:$0xf0]  ;;  %v949_v14 = vld [vmem:[#allocation5 + $0x94] sm:$0xf]  ;;  %v748_v17 = vor.u32 %v950_v11, %v747_v9  ;;  %v675_v19 = vld [vmem:[#allocation5] sm:$0xf] }
  0x26   :  { %296 = vmatpush.bf16.msra.mxu0 %v700_v56  ;;  %v749_v15 = vld [vmem:[#allocation5 + $0x98] sm:$0xf0]  ;;  %v688_v18 = vor.u32 %v933_v12, %v685_v13  ;;  %v932_v20 = vld [vmem:[#allocation5 + $0x4] sm:$0xf0]  ;;  %v739_v21 = vld [vmem:[#allocation5 + $0x80] sm:$0xf] }
  0x27   :  { %310 = vmatpush.bf16.msra.mxu1 %v764_v57  ;;  %v752_v22 = vor.u32 %v949_v14, %v749_v15  ;;  %v948_v23 = vld [vmem:[#allocation5 + $0x84] sm:$0xf0]  ;;  %v931_v24 = vld [vmem:[#allocation5 + $0x4] sm:$0xf]  ;;  %v677_v25 = vld [vmem:[#allocation5 + $0x8] sm:$0xf0]  ;;  %v676_v28 = vor.u32 %v932_v20, %v675_v19 }
  0x28   :  { %324 = vmatpush.bf16.msra.mxu2 %v704_v58  ;;  %v947_v26 = vld [vmem:[#allocation5 + $0x84] sm:$0xf]  ;;  %v741_v27 = vld [vmem:[#allocation5 + $0x88] sm:$0xf0]  ;;  %v667_v29 = vld [vmem:[#allocation2] sm:$0xf]  ;;  %v740_v31 = vor.u32 %v948_v23, %v739_v21  ;;  %v680_v32 = vor.u32 %v931_v24, %v677_v25 }
  0x29   :  { %338 = vmatpush.bf16.msra.mxu3 %v768_v62  ;;  %v930_v30 = vld [vmem:[#allocation2 + $0x4] sm:$0xf0]  ;;  %v929_v33 = vld [vmem:[#allocation2 + $0x4] sm:$0xf]  ;;  %v669_v34 = vld [vmem:[#allocation2 + $0x8] sm:$0xf0]  ;;  %v744_v35 = vor.u32 %v947_v26, %v741_v27 }
  0x2a   :  { %297 = vmatpush.bf16.msra.mxu0 %v692_v4  ;;  %v668_v36 = vor.u32 %v930_v30, %v667_v29  ;;  %v672_v37 = vor.u32 %v929_v33, %v669_v34  ;;  %v859_v38 = vld [vmem:[#allocation8 + $0x70] sm:$0xf]  ;;  %v978_v39 = vld [vmem:[#allocation8 + $0x74] sm:$0xf0]  ;;  %v977_v40 = vld [vmem:[#allocation8 + $0x74] sm:$0xf] }
  0x2b   :  { %311 = vmatpush.bf16.msra.mxu1 %v756_v5  ;;  %v860_v41 = vor.u32 %v978_v39, %v859_v38  ;;  %v861_v42 = vld [vmem:[#allocation8 + $0x78] sm:$0xf0]  ;;  %v851_v44 = vld [vmem:[#allocation8 + $0x60] sm:$0xf]  ;;  %v976_v45 = vld [vmem:[#allocation8 + $0x64] sm:$0xf0] }
  0x2c   :  { %325 = vmatpush.bf16.msra.mxu2 %v696_v6  ;;  %v864_v43 = vor.u32 %v977_v40, %v861_v42  ;;  %v975_v46 = vld [vmem:[#allocation8 + $0x64] sm:$0xf]  ;;  %v852_v47 = vor.u32 %v976_v45, %v851_v44  ;;  %v853_v48 = vld [vmem:[#allocation8 + $0x68] sm:$0xf0]  ;;  %v923_v50 = vld [vmem:[#allocation8 + $0xf0] sm:$0xf] }
  0x2d   :  { %339 = vmatpush.bf16.msra.mxu3 %v760_v10  ;;  %v856_v49 = vor.u32 %v975_v46, %v853_v48  ;;  %v994_v51 = vld [vmem:[#allocation8 + $0xf4] sm:$0xf0]  ;;  %v993_v52 = vld [vmem:[#allocation8 + $0xf4] sm:$0xf]  ;;  %v925_v54 = vld [vmem:[#allocation8 + $0xf8] sm:$0xf0] }
  0x2e   :  { %298 = vmatpush.bf16.msra.mxu0 %v684_v16  ;;  %v924_v53 = vor.u32 %v994_v51, %v923_v50  ;;  %v928_v55 = vor.u32 %v993_v52, %v925_v54  ;;  %v843_v56 = vld [vmem:[#allocation8 + $0x50] sm:$0xf]  ;;  %v974_v57 = vld [vmem:[#allocation8 + $0x54] sm:$0xf0]  ;;  %v973_v58 = vld [vmem:[#allocation8 + $0x54] sm:$0xf] }
  0x2f   :  { %312 = vmatpush.bf16.msra.mxu1 %v748_v17  ;;  %v844_v59 = vor.u32 %v974_v57, %v843_v56  ;;  %v845_v60 = vld [vmem:[#allocation8 + $0x58] sm:$0xf0]  ;;  %v915_v62 = vld [vmem:[#allocation8 + $0xe0] sm:$0xf]  ;;  %v992_v63 = vld [vmem:[#allocation8 + $0xe4] sm:$0xf0] }
  0x30   :  { %326 = vmatpush.bf16.msra.mxu2 %v688_v18  ;;  %v848_v61 = vor.u32 %v973_v58, %v845_v60  ;;  %v991_v0 = vld [vmem:[#allocation8 + $0xe4] sm:$0xf]  ;;  %v916_v1 = vor.u32 %v992_v63, %v915_v62  ;;  %v917_v2 = vld [vmem:[#allocation8 + $0xe8] sm:$0xf0]  ;;  %v835_v4 = vld [vmem:[#allocation8 + $0x40] sm:$0xf] }
  0x31   :  { %340 = vmatpush.bf16.msra.mxu3 %v752_v22  ;;  %v920_v3 = vor.u32 %v991_v0, %v917_v2  ;;  %v972_v5 = vld [vmem:[#allocation8 + $0x44] sm:$0xf0]  ;;  %v971_v6 = vld [vmem:[#allocation8 + $0x44] sm:$0xf]  ;;  %v1191_v7 = vld [vmem:[#allocation7] sm:$0x3] }
  0x32   :  { %299 = vmatpush.bf16.msra.mxu0 %v676_v28  ;;  %v836_v8 = vor.u32 %v972_v5, %v835_v4  ;;  %v837_v9 = vld [vmem:[#allocation8 + $0x48] sm:$0xf0]  ;;  %v907_v11 = vld [vmem:[#allocation8 + $0xd0] sm:$0xf]  ;;  %v990_v12 = vld [vmem:[#allocation8 + $0xd4] sm:$0xf0] }
  0x33   :  { %313 = vmatpush.bf16.msra.mxu1 %v740_v31  ;;  %v840_v10 = vor.u32 %v971_v6, %v837_v9  ;;  %v989_v13 = vld [vmem:[#allocation8 + $0xd4] sm:$0xf]  ;;  %v908_v14 = vor.u32 %v990_v12, %v907_v11  ;;  %v909_v15 = vld [vmem:[#allocation8 + $0xd8] sm:$0xf0]  ;;  %v827_v17 = vld [vmem:[#allocation8 + $0x30] sm:$0xf] }
  0x34   :  { %327 = vmatpush.bf16.msra.mxu2 %v680_v32  ;;  %v912_v16 = vor.u32 %v989_v13, %v909_v15  ;;  %v970_v18 = vld [vmem:[#allocation8 + $0x34] sm:$0xf0]  ;;  %v969_v19 = vld [vmem:[#allocation8 + $0x34] sm:$0xf]  ;;  %v118_v20 = vperm.slane %v1191_v7, 0  ;;  %v119_v6 = vperm.slane %v1191_v7, 1 }
  0x35   :  { %341 = vmatpush.bf16.msra.mxu3 %v744_v35  ;;  %300 = vmatmul.bf16.vlgmr.msra.gmra.mxu0 %v668_v36  ;;  %v828_v21 = vor.u32 %v970_v18, %v827_v17  ;;  %v829_v22 = vld [vmem:[#allocation8 + $0x38] sm:$0xf0]  ;;  %v899_v24 = vld [vmem:[#allocation8 + $0xc0] sm:$0xf]  ;;  %v988_v25 = vld [vmem:[#allocation8 + $0xc4] sm:$0xf0] }
  0x36   :  { %314 = vmatmul.bf16.vlgmr.msra.gmra.mxu1 %v672_v37  ;;  %584 = vmatpush.bf16.msrb.mxu0 %v860_v41  ;;  %v832_v23 = vor.u32 %v969_v19, %v829_v22  ;;  %v987_v26 = vld [vmem:[#allocation8 + $0xc4] sm:$0xf]  ;;  %v900_v27 = vor.u32 %v988_v25, %v899_v24  ;;  %v901_v28 = vld [vmem:[#allocation8 + $0xc8] sm:$0xf0]  ;;  %v819_v29 = vld [vmem:[#allocation8 + $0x20] sm:$0xf] }
  0x37   :  { %328 = vmatmul.bf16.vlgmr.msra.gmra.mxu2 %v668_v36  ;;  %598 = vmatpush.bf16.msrb.mxu1 %v924_v53  ;;  %v968_v30 = vld [vmem:[#allocation8 + $0x24] sm:$0xf0]  ;;  %v904_v31 = vor.u32 %v987_v26, %v901_v28  ;;  %v967_v33 = vld [vmem:[#allocation8 + $0x24] sm:$0xf]  ;;  %v821_v34 = vld [vmem:[#allocation8 + $0x28] sm:$0xf0] }
  0x38   :  { %342 = vmatmul.bf16.vlgmr.msra.gmra.mxu3 %v672_v37  ;;  %612 = vmatpush.bf16.msrb.mxu2 %v864_v43  ;;  %v820_v32 = vor.u32 %v968_v30, %v819_v29  ;;  %v891_v35 = vld [vmem:[#allocation8 + $0xb0] sm:$0xf]  ;;  %v824_v36 = vor.u32 %v967_v33, %v821_v34  ;;  %v986_v37 = vld [vmem:[#allocation8 + $0xb4] sm:$0xf0]  ;;  %v985_v38 = vld [vmem:[#allocation8 + $0xb4] sm:$0xf] }
  0x39   :  { %626 = vmatpush.bf16.msrb.mxu3 %v928_v55  ;;  %v893_v39 = vld [vmem:[#allocation8 + $0xb8] sm:$0xf0]  ;;  %v892_v40 = vor.u32 %v986_v37, %v891_v35  ;;  %v811_v42 = vld [vmem:[#allocation8 + $0x10] sm:$0xf]  ;;  %v966_v43 = vld [vmem:[#allocation8 + $0x14] sm:$0xf0] }
  0x3a   :  { %585 = vmatpush.bf16.msrb.mxu0 %v852_v47  ;;  %v896_v41 = vor.u32 %v985_v38, %v893_v39  ;;  %v965_v44 = vld [vmem:[#allocation8 + $0x14] sm:$0xf]  ;;  %v812_v45 = vor.u32 %v966_v43, %v811_v42  ;;  %v813_v46 = vld [vmem:[#allocation8 + $0x18] sm:$0xf0]  ;;  %v883_v47 = vld [vmem:[#allocation8 + $0xa0] sm:$0xf] }
  0x3b   :  { %599 = vmatpush.bf16.msrb.mxu1 %v916_v1  ;;  %v984_v48 = vld [vmem:[#allocation8 + $0xa4] sm:$0xf0]  ;;  %v983_v50 = vld [vmem:[#allocation8 + $0xa4] sm:$0xf]  ;;  %v885_v51 = vld [vmem:[#allocation8 + $0xa8] sm:$0xf0] }
  0x3c   :  { %613 = vmatpush.bf16.msrb.mxu2 %v856_v49  ;;  %v816_v49 = vor.u32 %v965_v44, %v813_v46  ;;  %v803_v52 = vld [vmem:[#allocation8] sm:$0xf]  ;;  %v884_v53 = vor.u32 %v984_v48, %v883_v47  ;;  %v964_v54 = vld [vmem:[#allocation8 + $0x4] sm:$0xf0]  ;;  %v963_v55 = vld [vmem:[#allocation8 + $0x4] sm:$0xf]  ;;  %v888_v57 = vor.u32 %v983_v50, %v885_v51 }
  0x3d   :  { %627 = vmatpush.bf16.msrb.mxu3 %v920_v3  ;;  %v805_v56 = vld [vmem:[#allocation8 + $0x8] sm:$0xf0]  ;;  %v875_v58 = vld [vmem:[#allocation8 + $0x90] sm:$0xf]  ;;  %v804_v60 = vor.u32 %v964_v54, %v803_v52  ;;  %v877_v62 = vld [vmem:[#allocation8 + $0x98] sm:$0xf0] }
  0x3e   :  { %586 = vmatpush.bf16.msrb.mxu0 %v844_v59  ;;  %v982_v59 = vld [vmem:[#allocation8 + $0x94] sm:$0xf0]  ;;  %v808_v0 = vor.u32 %v963_v55, %v805_v56  ;;  %v980_v9 = vld [vmem:[#allocation8 + $0x84] sm:$0xf0]  ;;  %v869_v13 = vld [vmem:[#allocation8 + $0x88] sm:$0xf0] }
  0x3f   :  { %600 = vmatpush.bf16.msrb.mxu1 %v908_v14  ;;  %v876_v3 = vor.u32 %v982_v59, %v875_v58  ;;  %s1146_s13 = smov [#allocation10]   ;;  %s650_s16 = sshll.u32 %s1210_s5, 4  ;;  %s651_s16 = int_to_ptr.hbm [resolvable:$true] %s650_s16 }
  0x40   :  { %614 = vmatpush.bf16.msrb.mxu2 %v848_v61  ;;  %v981_v61 = vld [vmem:[#allocation8 + $0x94] sm:$0xf]  ;;  %s1147_s17 = smov 256   ;;  %s1148_s18 = smov 16  }
  0x41   :  { %628 = vmatpush.bf16.msrb.mxu3 %v912_v16  ;;  %v880_v4 = vor.u32 %v981_v61, %v877_v62 }
  0x42   :  { %587 = vmatpush.bf16.msrb.mxu0 %v836_v8  ;;  %v867_v8 = vld [vmem:[#allocation8 + $0x80] sm:$0xf] }
  0x43   :  { %601 = vmatpush.bf16.msrb.mxu1 %v900_v27  ;;  %v868_v12 = vor.u32 %v980_v9, %v867_v8 }
  0x44   :  { %615 = vmatpush.bf16.msrb.mxu2 %v840_v10  ;;  %v979_v10 = vld [vmem:[#allocation8 + $0x84] sm:$0xf] }
  0x45   :  { %629 = vmatpush.bf16.msrb.mxu3 %v904_v31  ;;  %v872_v14 = vor.u32 %v979_v10, %v869_v13 }
  0x46   :  { %588 = vmatpush.bf16.msrb.mxu0 %v828_v21 }
  0x47   :  { %602 = vmatpush.bf16.msrb.mxu1 %v892_v40 }
  0x48   :  { %616 = vmatpush.bf16.msrb.mxu2 %v832_v23 }
  0x49   :  { %630 = vmatpush.bf16.msrb.mxu3 %v896_v41 }
  0x4a   :  { %589 = vmatpush.bf16.msrb.mxu0 %v820_v32 }
  0x4b   :  { %603 = vmatpush.bf16.msrb.mxu1 %v884_v53 }
  0x4c   :  { %617 = vmatpush.bf16.msrb.mxu2 %v824_v36 }
  0x4d   :  { %631 = vmatpush.bf16.msrb.mxu3 %v888_v57 }
  0x4e   :  { %590 = vmatpush.bf16.msrb.mxu0 %v812_v45 }
  0x4f   :  { %604 = vmatpush.bf16.msrb.mxu1 %v876_v3 }
  0x50   :  { %618 = vmatpush.bf16.msrb.mxu2 %v816_v49 }
  0x51   :  { %632 = vmatpush.bf16.msrb.mxu3 %v880_v4 }
  0x52   :  { %591 = vmatpush.bf16.msrb.mxu0 %v804_v60 }
  0x53   :  { %605 = vmatpush.bf16.msrb.mxu1 %v868_v12 }
  0x54   :  { %619 = vmatpush.bf16.msrb.mxu2 %v808_v0 }
  0x55   :  { %633 = vmatpush.bf16.msrb.mxu3 %v872_v14 }
  0xb2   :  { %v301_v63 = vpop.f32.mrf.mxu0 }
  0xb3   :  { %v302_v1 = vadd.f32 %v301_v63, %v118_v20  ;;  %v315_v2 = vpop.f32.mrf.mxu1  ;;  %v418_v63 = vld [vmem:[%s1209_s4] sm:$0x3]  ;;  %s648_s4 = sshll.u32 %s1146_s13, 4  ;;  %s649_s4 = int_to_ptr.vmem [resolvable:$true] %s648_s4 }
  0xb5   :  { %v316_v5 = vadd.f32 %v315_v2, %v302_v1  ;;  %v420_v1 = vperm.slane %v418_v63, 0 }
  0xb7   :  { %v352_v11 = vmul.f32 0.044715, %v316_v5  ;;  %v348_v48 = vmul.f32 0.5, %v316_v5 }
  0xb9   :  { %v356_v15 = vmul.f32 %v352_v11, %v316_v5 }
  0xba   :  { %v329_v16 = vpop.f32.mrf.mxu2  ;;  %v303_v19 = vpop.f32.mrf.mxu0 }
  0xbb   :  { %v330_v17 = vadd.f32 %v329_v16, %v119_v6  ;;  %v343_v18 = vpop.f32.mrf.mxu3  ;;  %v304_v21 = vadd.f32 %v303_v19, %v118_v20  ;;  %v360_v22 = vmul.f32 %v356_v15, %v316_v5  ;;  %v317_v24 = vpop.f32.mrf.mxu1 }
  0xbd   :  { %v344_v23 = vadd.f32 %v343_v18, %v330_v17  ;;  %v318_v25 = vadd.f32 %v317_v24, %v304_v21  ;;  %v364_v26 = vadd.f32 %v360_v22, %v316_v5 }
  0xbf   :  { %v353_v27 = vmul.f32 0.044715, %v344_v23  ;;  %v354_v28 = vmul.f32 0.044715, %v318_v25  ;;  %v368_v32 = vmul.f32 0.7978846, %v364_v26 }
  0xc0   :  { %v350_v49 = vmul.f32 0.5, %v318_v25  ;;  %v349_v57 = vmul.f32 0.5, %v344_v23 }
  0xc1   :  { %v357_v29 = vmul.f32 %v353_v27, %v344_v23  ;;  %v358_v30 = vmul.f32 %v354_v28, %v318_v25  ;;  %1004 = vtanh.f32 %v368_v32 }
  0xc2   :  { %v331_v31 = vpop.f32.mrf.mxu2 }
  0xc3   :  { %v332_v33 = vadd.f32 %v331_v31, %v119_v6  ;;  %v361_v34 = vmul.f32 %v357_v29, %v344_v23  ;;  %v345_v35 = vpop.f32.mrf.mxu3  ;;  %v362_v36 = vmul.f32 %v358_v30, %v318_v25  ;;  %v421_v6 = vperm.slane %v418_v63, 1 }
  0xc5   :  { %v346_v37 = vadd.f32 %v345_v35, %v332_v33  ;;  %v365_v7 = vadd.f32 %v361_v34, %v344_v23  ;;  %v366_v20 = vadd.f32 %v362_v36, %v318_v25 }
  0xc7   :  { %v355_v38 = vmul.f32 0.044715, %v346_v37  ;;  %v370_v39 = vmul.f32 0.7978846, %v366_v20  ;;  %v369_v41 = vmul.f32 0.7978846, %v365_v7  ;;  %v1005_v43 = vpop.eup %1004 }
  0xc8   :  { %v376_v45 = vadd.f32 1.0, %v1005_v43  ;;  %v351_v58 = vmul.f32 0.5, %v346_v37 }
  0xc9   :  { %v359_v40 = vmul.f32 %v355_v38, %v346_v37  ;;  %1006 = vtanh.f32 %v370_v39 }
  0xca   :  { %1008 = vtanh.f32 %v369_v41  ;;  %v380_v52 = vmul.f32 %v376_v45, %v348_v48 }
  0xcb   :  { %v363_v42 = vmul.f32 %v359_v40, %v346_v37 }
  0xcd   :  { %v367_v44 = vadd.f32 %v363_v42, %v346_v37 }
  0xcf   :  { %v371_v46 = vmul.f32 0.7978846, %v367_v44  ;;  %v1007_v47 = vpop.eup %1006 }
  0xd0   :  { %v378_v50 = vadd.f32 1.0, %v1007_v47  ;;  %v1009_v51 = vpop.eup %1008 }
  0xd1   :  { %1010 = vtanh.f32 %v371_v46  ;;  %v377_v55 = vadd.f32 1.0, %v1009_v51 }
  0xd2   :  { %v382_v53 = vmul.f32 %v378_v50, %v350_v49 }
  0xd3   :  { %v381_v60 = vmul.f32 %v377_v55, %v349_v57 }
  0xd4   :  { %v384_v54 = vpack.c.bf16 %v382_v53, %v380_v52 }
  0xd6   :  { %592 = vmatmul.bf16.vlgmr.msrb.gmra.mxu0 %v384_v54  ;;  %620 = vmatmul.bf16.vlgmr.msrb.gmra.mxu2 %v384_v54 }
  0xd7   :  { %v1011_v56 = vpop.eup %1010 }
  0xd8   :  { %v379_v59 = vadd.f32 1.0, %v1011_v56 }
  0xda   :  { %v383_v61 = vmul.f32 %v379_v59, %v351_v58 }
  0xdc   :  { %v385_v62 = vpack.c.bf16 %v383_v61, %v381_v60 }
  0xde   :  { %606 = vmatmul.bf16.vlgmr.msrb.gmra.mxu1 %v385_v62  ;;  %634 = vmatmul.bf16.vlgmr.msrb.gmra.mxu3 %v385_v62 }
 0x153   :  { %v593_v0 = vpop.f32.mrf.mxu0 }
 0x154   :  { %v594_v2 = vadd.f32 %v593_v0, %v420_v1 }
 0x159   :  { %v621_v4 = vpop.f32.mrf.mxu2 }
 0x15a   :  { %v622_v9 = vadd.f32 %v621_v4, %v421_v6 }
 0x15b   :  { %v607_v3 = vpop.f32.mrf.mxu1  ;;  %v595_v8 = vpop.f32.mrf.mxu0 }
 0x15c   :  { %v608_v5 = vadd.f32 %v607_v3, %v594_v2  ;;  %v596_v11 = vadd.f32 %v595_v8, %v420_v1 }
 0x15e   :  { %640 = vst [vmem:[#allocation10] sm:$0xff] %v608_v5 }
 0x161   :  { %v635_v10 = vpop.f32.mrf.mxu3  ;;  %v623_v15 = vpop.f32.mrf.mxu2 }
 0x162   :  { %v636_v12 = vadd.f32 %v635_v10, %v622_v9  ;;  %v624_v16 = vadd.f32 %v623_v15, %v421_v6 }
 0x163   :  { %v609_v13 = vpop.f32.mrf.mxu1 }
 0x164   :  { %641 = vst [vmem:[#allocation10 + $0x8] sm:$0xff] %v636_v12  ;;  %v610_v14 = vadd.f32 %v609_v13, %v596_v11 }
 0x166   :  { %642 = vst [vmem:[#allocation10 + $0x10] sm:$0xff] %v610_v14 }
 0x169   :  { %v637_v17 = vpop.f32.mrf.mxu3 }
 0x16a   :  { %v638_v18 = vadd.f32 %v637_v17, %v624_v16 }
 0x16c   :  { %643 = vst [vmem:[#allocation10 + $0x18] sm:$0xff] %v638_v18 }
 0x16d   :  { %656 = dma.vmem_to_hbm [thread:$0]  %s649_s4, 512, %s651_s16, [#allocation4], %s1147_s17, %s1147_s17, %s1148_s18  }
 0x16e   :  { %1138 = dma.done.wait [#allocation4], 512  }
 0x16f   :  { %1139 = vsyncadd [#allocation4], 4294966784 }
 0x170   :  { %661 = vsyncpa [#allocation3], 1 }
 0x171   :  { %662 = vsyncpa [#allocation6], 1 }
 0x172   :  { %663 = vsyncpa [#allocation9], 1 }
 0x173   :  { %664 = vsyncpa [#allocation4], 1 }

</bundles_post_ra>
